<compile_context>
chip_gen: v7x
topology: tpu7x:2x2x1
jax: 0.10.0
libtpu: 0.0.40
codegen_flags: <defaults>
</compile_context>

<pallas_src>
import functools

import jax
import jax.numpy as jnp
from jax.experimental import pallas as pl
from jax.experimental.pallas import tpu as pltpu

EPS = 1e-5  # nn.LayerNorm default


def _round_up(a: int, m: int) -> int:
    return (a + m - 1) // m * m


def _pick_col_tile(dim_pad: int, tn_max: int) -> int:
    """Largest column tile <= tn_max that divides dim_pad, preferring x256 alignment."""
    tn_max = max(128, min(tn_max, dim_pad))
    for align in (256, 128):
        tn = (tn_max // align) * align
        while tn >= align:
            if dim_pad % tn == 0:
                return tn
            tn -= align
    return 128


def _vmem_estimate(tm, tn, dim_pad, x_bytes, mm_bytes, out_bytes):
    return (2 * tm * dim_pad * x_bytes        # x row tile (double-buffered)
            + 2 * dim_pad * tn * mm_bytes     # W column tile (double-buffered)
            + 2 * tm * tn * out_bytes         # output tile (double-buffered)
            + tm * dim_pad * mm_bytes         # cached LN(x) scratch
            + 6 * dim_pad * 4)                # gamma / beta / bias


def _fit_tiles(n, dim_pad, tm_req, tn_req, x_bytes, mm_bytes, out_bytes, budget):
    """Pick (tm, tn) under the VMEM budget: shrink tm first, then tn."""
    tn = _pick_col_tile(dim_pad, tn_req)
    tm = min(_round_up(tm_req, 8), _round_up(n, 8))
    while _vmem_estimate(tm, tn, dim_pad, x_bytes, mm_bytes, out_bytes) > budget and tm > 8:
        tm = max(8, _round_up(tm // 2, 8))
    while _vmem_estimate(tm, tn, dim_pad, x_bytes, mm_bytes, out_bytes) > budget and tn > 128:
        tn = _pick_col_tile(dim_pad, tn - 128)
    return tm, tn


def _prenorm_residual_kernel(x_row_ref, gamma_ref, beta_ref, w_ref, b_ref,
                             o_ref, y_scr, *, dim_true: int, tn: int):
    """One (row-tile i, output-column-tile j) grid step.

    LayerNorm of the full row tile is computed only at j == 0 and cached in
    `y_scr` (VMEM, matmul dtype); every j reuses it for the MXU matmul against
    the j-th column tile of W, then adds bias + the matching residual slice of
    the resident x row tile (no second x read from HBM).
    """
    j = pl.program_id(1)
    dim_pad = x_row_ref.shape[-1]

    @pl.when(j == 0)
    def _layernorm():
        x = x_row_ref[...].astype(jnp.float32)                  # (tm, dim_pad)
        inv_d = 1.0 / dim_true
        mean = jnp.sum(x, axis=-1, keepdims=True) * inv_d        # padded lanes are 0
        centered = x - mean
        # Two-pass centered variance (numerical stability); mask padded lanes.
        if dim_pad != dim_true:
            lane = jax.lax.broadcasted_iota(jnp.int32, x.shape, 1)
            sq = jnp.where(lane < dim_true, centered * centered, 0.0)
        else:
            sq = centered * centered
        var = jnp.sum(sq, axis=-1, keepdims=True) * inv_d
        xn = centered * jax.lax.rsqrt(var + EPS)
        # gamma/beta are zero-padded, so padded lanes of y are exactly 0.
        y = xn * gamma_ref[...] + beta_ref[...]
        y_scr[...] = y.astype(y_scr.dtype)                       # bf16 cache for MXU

    # fn == Linear(dim, dim): (tm, dim_pad) @ (dim_pad, tn) on the MXU, f32 acc.
    proj = jnp.dot(y_scr[...], w_ref[...], preferred_element_type=jnp.float32)
    proj = proj + b_ref[...]                                     # bias (f32)

    # Residual add in f32 from the resident row tile (lane-aligned dynamic slice).
    col0 = pl.multiple_of(j * tn, 128)
    res = x_row_ref[:, pl.ds(col0, tn)].astype(jnp.float32)
    o_ref[...] = (proj + res).astype(o_ref.dtype)


def prenorm_residual(x, gamma, beta, w, b, *, tm=None, tn=512,
                     mm_dtype=jnp.bfloat16, cast_x_to_mm_dtype=False):
    """out = Linear(LayerNorm(x)) + x, fused in one Pallas kernel.

    x:           [batch, seq, dim]
    gamma, beta: [dim]            (LayerNorm affine)
    w:           [dim, dim]       stored (in, out)  ->  pass `torch_linear.weight.T`
    b:           [dim]
    """
    batch, seq, dim = x.shape
    n = batch * seq
    out_dtype = x.dtype

    # ---- pad feature dim to a lane-dense multiple of 128 (zeros) -------------
    dim_pad = _round_up(dim, 128)
    pad_d = dim_pad - dim

    x2d = x.reshape(n, dim)
    if cast_x_to_mm_dtype:
        x2d = x2d.astype(mm_dtype)   # halves x HBM/VMEM traffic; LN stats stay f32
    if pad_d:
        x2d = jnp.pad(x2d, ((0, 0), (0, pad_d)))
        gamma = jnp.pad(gamma, (0, pad_d))
        beta = jnp.pad(beta, (0, pad_d))
        w = jnp.pad(w, ((0, pad_d), (0, pad_d)))
        b = jnp.pad(b, (0, pad_d))

    x_bytes = jnp.dtype(x2d.dtype).itemsize
    mm_bytes = jnp.dtype(mm_dtype).itemsize
    out_bytes = jnp.dtype(out_dtype).itemsize

    # ---- generation-aware VMEM budget & row-tile size -------------------------
    try:
        physical_vmem = int(pltpu.get_tpu_info().vmem_capacity_bytes)
    except Exception:
        physical_vmem = 64 * 2 ** 20            # conservative fallback (v7x-sized)
    big_vmem = physical_vmem >= 120 * 2 ** 20   # v5e / v6e class (128 MiB per TC)
    two_tc = not big_vmem                       # 64 MiB-per-TC class (v7x, 2 TCs)
    if tm is None:
        tm = 1024 if big_vmem else 512          # v6e needs ~tm>=1024 to be MXU-bound
    budget_cap = (100 * 2 ** 20) if big_vmem else max(
        32 * 2 ** 20, min(56 * 2 ** 20, physical_vmem - 8 * 2 ** 20))
    tile_budget = budget_cap - 4 * 2 ** 20      # headroom for Mosaic internal scratch

    tm_eff, tn_eff = _fit_tiles(n, dim_pad, tm, tn,
                                x_bytes, mm_bytes, out_bytes, tile_budget)

    # ---- pad rows; balance row tiles across the two TensorCores on v7x --------
    n_pad = _round_up(n, tm_eff)
    row_tiles = n_pad // tm_eff
    if two_tc and row_tiles > 1 and row_tiles % 2:
        row_tiles += 1
        n_pad = row_tiles * tm_eff
    if n_pad != n:
        x2d = jnp.pad(x2d, ((0, n_pad - n), (0, 0)))

    grid = (row_tiles, dim_pad // tn_eff)

    gamma2d = gamma.reshape(1, dim_pad).astype(jnp.float32)
    beta2d = beta.reshape(1, dim_pad).astype(jnp.float32)
    b2d = b.reshape(1, dim_pad).astype(jnp.float32)
    w_mm = w.astype(mm_dtype)   # bf16 W: halves the dominant HBM/VMEM traffic

    vmem_est = _vmem_estimate(tm_eff, tn_eff, dim_pad, x_bytes, mm_bytes, out_bytes)
    vmem_limit = int(min(max(int(1.25 * vmem_est), 32 * 2 ** 20),
                         budget_cap, physical_vmem))

    # Real traffic: x read once per row tile, W re-streamed once per row tile,
    # output written once.
    cost = pl.CostEstimate(
        flops=2 * n_pad * dim_pad * dim_pad + 8 * n_pad * dim_pad,
        transcendentals=n_pad,                   # one rsqrt per row
        bytes_accessed=(n_pad * dim_pad * x_bytes
                        + row_tiles * dim_pad * dim_pad * mm_bytes
                        + n_pad * dim_pad * out_bytes
                        + 3 * dim_pad * 4),
    )

    kernel = functools.partial(_prenorm_residual_kernel, dim_true=dim, tn=tn_eff)

    out2d = pl.pallas_call(
        kernel,
        out_shape=jax.ShapeDtypeStruct((n_pad, dim_pad), out_dtype),
        grid_spec=pltpu.PrefetchScalarGridSpec(
            num_scalar_prefetch=0,
            grid=grid,
            in_specs=[
                # x row tile: block index constant in j -> fetched once per i,
                # reused for both the LN (j==0) and the per-j residual slice.
                pl.BlockSpec((tm_eff, dim_pad), lambda i, j: (i, 0)),
                pl.BlockSpec((1, dim_pad), lambda i, j: (0, 0)),       # gamma
                pl.BlockSpec((1, dim_pad), lambda i, j: (0, 0)),       # beta
                pl.BlockSpec((dim_pad, tn_eff), lambda i, j: (0, j)),  # W column tile
                pl.BlockSpec((1, tn_eff), lambda i, j: (0, j)),        # bias tile
            ],
            out_specs=pl.BlockSpec((tm_eff, tn_eff), lambda i, j: (i, j)),
            scratch_shapes=[pltpu.VMEM((tm_eff, dim_pad), mm_dtype)],  # cached LN(x)
        ),
        compiler_params=pltpu.CompilerParams(
            dimension_semantics=("parallel", "arbitrary"),
            vmem_limit_bytes=vmem_limit,
        ),
        cost_estimate=cost,
        # TODO(synk): if profiling shows the j==0 LN step exposing W DMA, try
        # pipeline_mode=pl.Buffered(3) on the W BlockSpec (needs VMEM headroom).
    )(x2d, gamma2d, beta2d, w_mm, b2d)

    return out2d[:n, :dim].reshape(batch, seq, dim)


def reference(x, gamma, beta, w, b, mm_dtype=jnp.bfloat16):
    """Pure-JAX reference mirroring the kernel's bf16-matmul / f32-everything-else."""
    xf = x.astype(jnp.float32)
    mean = jnp.mean(xf, axis=-1, keepdims=True)
    var = jnp.mean((xf - mean) ** 2, axis=-1, keepdims=True)
    xn = (xf - mean) * jax.lax.rsqrt(var + EPS)
    y = xn * gamma.astype(jnp.float32) + beta.astype(jnp.float32)
    proj = jnp.dot(y.astype(mm_dtype), w.astype(mm_dtype),
                   preferred_element_type=jnp.float32)
    return (proj + b.astype(jnp.float32) + xf).astype(x.dtype)


if __name__ == "__main__":
    # Small demo shapes: batch=2, seq=8, dim=32
    batch, seq, dim = 2, 8, 32
    key = jax.random.PRNGKey(0)
    kx, kw, kb = jax.random.split(key, 3)

    x = jax.random.normal(kx, (batch, seq, dim), dtype=jnp.float32)

    # LayerNorm params: PyTorch default init (weight=1, bias=0)
    gamma = jnp.ones((dim,), jnp.float32)
    beta = jnp.zeros((dim,), jnp.float32)

    # fn = Linear(dim, dim). Torch stores weight as (out, in); the kernel expects
    # (in, out), so pass the transpose — mirroring `torch_linear.weight.T`.
    w_torch = jax.random.normal(kw, (dim, dim), dtype=jnp.float32) * (1.0 / jnp.sqrt(dim))
    w = w_torch.T
    b = jax.random.normal(kb, (dim,), dtype=jnp.float32) * 0.01

    out = prenorm_residual(x, gamma, beta, w, b)
    out = jax.block_until_ready(out)

    ref = reference(x, gamma, beta, w, b)
    assert out.shape == (batch, seq, dim)
    err = jnp.max(jnp.abs(out - ref))
    assert jnp.allclose(out, ref, atol=1e-3, rtol=1e-3), f"mismatch vs reference: {err:.3e}"

    # TODO(synk): `fn` in the original module is an arbitrary sub-module; here it
    # is instantiated as a single Linear(dim, dim). Swap in other fns as needed.
    print("KERNEL_OK")
</pallas_src>

<mosaic_0001>
module attributes {stable_mosaic.version = 11 : i64} {
  func.func @_prenorm_residual_kernel(%arg0: i32, %arg1: i32, %arg2: memref<16x128xf32, #tpu.memory_space<vmem>>, %arg3: memref<1x128xf32, #tpu.memory_space<vmem>>, %arg4: memref<1x128xf32, #tpu.memory_space<vmem>>, %arg5: memref<128x128xbf16, #tpu.memory_space<vmem>>, %arg6: memref<1x128xf32, #tpu.memory_space<vmem>>, %arg7: memref<16x128xf32, #tpu.memory_space<vmem>>, %arg8: memref<16x128xbf16, #tpu.memory_space<vmem>>) attributes {dimension_semantics = [#tpu.dimension_semantics<parallel>, #tpu.dimension_semantics<arbitrary>], iteration_bounds = array<i64: 1, 1>, scalar_prefetch = 0 : i64, scratch_operands = 1 : i64, tpu.core_type = #tpu.core_type<tc>, window_params = [{transform_indices = @transform_0, window_bounds = array<i64: 16, 128>}, {pipeline_mode = #tpu.pipeline_mode<synchronous>, transform_indices = @transform_1, window_bounds = array<i64: 1, 128>}, {pipeline_mode = #tpu.pipeline_mode<synchronous>, transform_indices = @transform_2, window_bounds = array<i64: 1, 128>}, {transform_indices = @transform_3, window_bounds = array<i64: 128, 128>}, {transform_indices = @transform_4, window_bounds = array<i64: 1, 128>}, {transform_indices = @transform_5, window_bounds = array<i64: 16, 128>}]} {
    %c0_i32 = arith.constant 0 : i32
    %0 = arith.cmpi eq, %arg1, %c0_i32 : i32
    %1 = arith.extui %0 : i1 to i32
    %c0_i32_0 = arith.constant 0 : i32
    %2 = arith.cmpi ne, %1, %c0_i32_0 : i32
    scf.if %2 {
      %c0_9 = arith.constant 0 : index
      %c0_10 = arith.constant 0 : index
      %15 = vector.load %arg2[%c0_9, %c0_10] : memref<16x128xf32, #tpu.memory_space<vmem>>, vector<16x128xf32>
      %cst_11 = arith.constant dense<0.000000e+00> : vector<16xf32>
      %16 = vector.multi_reduction <add>, %15, %cst_11 [1] : vector<16x128xf32> to vector<16xf32>
      %17 = vector.shape_cast %16 : vector<16xf32> to vector<16x1xf32>
      %cst_12 = arith.constant 3.125000e-02 : f32
      %18 = vector.broadcast %cst_12 : f32 to vector<16x1xf32>
      %19 = arith.mulf %17, %18 : vector<16x1xf32>
      %20 = vector.broadcast %19 : vector<16x1xf32> to vector<16x128xf32>
      %21 = arith.subf %15, %20 : vector<16x128xf32>
      %22 = tpu.iota {dimensions = array<i32: 1>} : vector<16x128xi32>
      %c32_i32 = arith.constant 32 : i32
      %23 = vector.broadcast %c32_i32 : i32 to vector<16x128xi32>
      %24 = arith.cmpi slt, %22, %23 : vector<16x128xi32>
      %25 = arith.mulf %21, %21 : vector<16x128xf32>
      %cst_13 = arith.constant 0.000000e+00 : f32
      %26 = vector.broadcast %cst_13 : f32 to vector<16x128xf32>
      %27 = arith.select %24, %25, %26 : vector<16x128xi1>, vector<16x128xf32>
      %cst_14 = arith.constant dense<0.000000e+00> : vector<16xf32>
      %28 = vector.multi_reduction <add>, %27, %cst_14 [1] : vector<16x128xf32> to vector<16xf32>
      %29 = vector.shape_cast %28 : vector<16xf32> to vector<16x1xf32>
      %cst_15 = arith.constant 3.125000e-02 : f32
      %30 = vector.broadcast %cst_15 : f32 to vector<16x1xf32>
      %31 = arith.mulf %29, %30 : vector<16x1xf32>
      %cst_16 = arith.constant 9.99999974E-6 : f32
      %32 = vector.broadcast %cst_16 : f32 to vector<16x1xf32>
      %33 = arith.addf %31, %32 : vector<16x1xf32>
      %34 = math.rsqrt %33 : vector<16x1xf32>
      %35 = vector.broadcast %34 : vector<16x1xf32> to vector<16x128xf32>
      %36 = arith.mulf %21, %35 : vector<16x128xf32>
      %c0_17 = arith.constant 0 : index
      %c0_18 = arith.constant 0 : index
      %37 = vector.load %arg3[%c0_17, %c0_18] : memref<1x128xf32, #tpu.memory_space<vmem>>, vector<1x128xf32>
      %38 = vector.broadcast %37 : vector<1x128xf32> to vector<16x128xf32>
      %39 = arith.mulf %36, %38 : vector<16x128xf32>
      %c0_19 = arith.constant 0 : index
      %c0_20 = arith.constant 0 : index
      %40 = vector.load %arg4[%c0_19, %c0_20] : memref<1x128xf32, #tpu.memory_space<vmem>>, vector<1x128xf32>
      %41 = vector.broadcast %40 : vector<1x128xf32> to vector<16x128xf32>
      %42 = arith.addf %39, %41 : vector<16x128xf32>
      %43 = arith.truncf %42 : vector<16x128xf32> to vector<16x128xbf16>
      %c0_21 = arith.constant 0 : index
      %c0_22 = arith.constant 0 : index
      %44 = vector.load %arg8[%c0_21, %c0_22] : memref<16x128xbf16, #tpu.memory_space<vmem>>, vector<16x128xbf16>
      tpu.vector_store %arg8[%c0_21, %c0_22], %43 {strides = array<i32>} : memref<16x128xbf16, #tpu.memory_space<vmem>>, vector<16x128xbf16>,
    } else {
    }
    %c0 = arith.constant 0 : index
    %c0_1 = arith.constant 0 : index
    %3 = vector.load %arg8[%c0, %c0_1] : memref<16x128xbf16, #tpu.memory_space<vmem>>, vector<16x128xbf16>
    %c0_2 = arith.constant 0 : index
    %c0_3 = arith.constant 0 : index
    %4 = vector.load %arg5[%c0_2, %c0_3] : memref<128x128xbf16, #tpu.memory_space<vmem>>, vector<128x128xbf16>
    %cst = arith.constant dense<0.000000e+00> : vector<16x128xf32>
    %5 = tpu.matmul %3, %4, %cst {dimension_numbers = #tpu.dot_dimension_numbers<[1], [0], [0], [1], [0, 0, 1, 1], [], []>} : vector<16x128xbf16>, vector<128x128xbf16>, vector<16x128xf32> -> vector<16x128xf32>
    %c0_4 = arith.constant 0 : index
    %c0_5 = arith.constant 0 : index
    %6 = vector.load %arg6[%c0_4, %c0_5] : memref<1x128xf32, #tpu.memory_space<vmem>>, vector<1x128xf32>
    %7 = vector.broadcast %6 : vector<1x128xf32> to vector<16x128xf32>
    %8 = arith.addf %5, %7 : vector<16x128xf32>
    %c128_i32 = arith.constant 128 : i32
    %9 = arith.muli %arg1, %c128_i32 : i32
    %10 = tpu.assume_multiple %9, 128 : i32
    %c0_6 = arith.constant 0 : index
    %11 = arith.index_cast %10 : i32 to index
    %12 = vector.load %arg2[%c0_6, %11] : memref<16x128xf32, #tpu.memory_space<vmem>>, vector<16x128xf32>
    %13 = arith.addf %8, %12 : vector<16x128xf32>
    %c0_7 = arith.constant 0 : index
    %c0_8 = arith.constant 0 : index
    %14 = vector.load %arg7[%c0_7, %c0_8] : memref<16x128xf32, #tpu.memory_space<vmem>>, vector<16x128xf32>
    tpu.vector_store %arg7[%c0_7, %c0_8], %13 {strides = array<i32>} : memref<16x128xf32, #tpu.memory_space<vmem>>, vector<16x128xf32>,
    return
  }
  func.func @transform_0(%arg0: i32, %arg1: i32) -> (i32, i32) {
    %c0_i32 = arith.constant 0 : i32
    %c0_i32_0 = arith.constant 0 : i32
    return %arg0, %c0_i32 : i32, i32
  }
  func.func @transform_1(%arg0: i32, %arg1: i32) -> (i32, i32) {
    %c0_i32 = arith.constant 0 : i32
    %c0_i32_0 = arith.constant 0 : i32
    %c0_i32_1 = arith.constant 0 : i32
    return %c0_i32, %c0_i32_0 : i32, i32
  }
  func.func @transform_2(%arg0: i32, %arg1: i32) -> (i32, i32) {
    %c0_i32 = arith.constant 0 : i32
    %c0_i32_0 = arith.constant 0 : i32
    %c0_i32_1 = arith.constant 0 : i32
    return %c0_i32, %c0_i32_0 : i32, i32
  }
  func.func @transform_3(%arg0: i32, %arg1: i32) -> (i32, i32) {
    %c0_i32 = arith.constant 0 : i32
    %c0_i32_0 = arith.constant 0 : i32
    return %c0_i32, %arg1 : i32, i32
  }
  func.func @transform_4(%arg0: i32, %arg1: i32) -> (i32, i32) {
    %c0_i32 = arith.constant 0 : i32
    %c0_i32_0 = arith.constant 0 : i32
    return %c0_i32, %arg1 : i32, i32
  }
  func.func @transform_5(%arg0: i32, %arg1: i32) -> (i32, i32) {
    %c0_i32 = arith.constant 0 : i32
    return %arg0, %arg1 : i32, i32
  }
}

</mosaic_0001>

<bundles_post_ra>
// kernel: tpu_custom_call.1
= control target key start
LH: loop header
LB: loop body
LE: loop exit
PB: predicated region body
PF: predicated region fallthrough
CT: control target
= control target key end

     0   :  { %10 = vsyncpa [#allocation4], 0  ;;  %s478_s0 = inlined_call_operand.hbm [shape: f32[16,128], index: 0, kind: input, shape index: {}]   ;;  %s479_s1 = inlined_call_operand.vmem [shape: f32[1,128], index: 1, kind: input, shape index: {}]   ;;  %s480_s2 = inlined_call_operand.vmem [shape: f32[1,128], index: 2, kind: input, shape index: {}]   ;;  %s481_s3 = inlined_call_operand.hbm [shape: bf16[128,128], index: 3, kind: input, shape index: {}]   ;;  %s482_s4 = inlined_call_operand.vmem [shape: f32[1,128], index: 4, kind: input, shape index: {}]   ;;  %s483_s5 = inlined_call_operand.hbm [shape: f32[16,128], index: 5, kind: output, shape index: {}]  }
   0x1   :  { %11 = vsyncpa [#allocation7], 0 }
   0x2   :  { %12 = vsyncpa [#allocation5], 0  ;;  %s378_s18 = smov [#allocation3]   ;;  %s306_s22 = scalar_lea.hbm %s478_s0, 256 }
   0x3   :  { %s18_s19 = sshll.u32 %s378_s18, 4  ;;  %p307_p0 = scmp.ne.s32.totalorder %s478_s0, %s306_s22  ;;  %s19_s19 = int_to_ptr.vmem [resolvable:$true] %s18_s19 }
   0x4   :  { %p310_p1 = scmp.lt.u32.totalorder %s306_s22, %s478_s0 }
   0x6   :  { %p312_p2 = pnand %p310_p1, %p307_p0 }
   0x8   :  { %315 = shalt.err (!%p312_p2)
}
   0x9   :  { %s316_s27 = scalar_lea.vmem %s19_s19, 256  ;;  %p321_p4 = scmp.lt.s32.totalorder %s19_s19, %s19_s19 }
   0xa   :  { %p317_p3 = scmp.ne.s32.totalorder %s19_s19, %s316_s27  ;;  %p322_p5 = scmp.lt.s32.totalorder %s316_s27, %s316_s27 }
   0xc   :  { %p323_p6 = por %p322_p5, %p321_p4 }
   0xe   :  { %p324_p7 = pnand %p323_p6, %p317_p3 }
  0x10   :  { %327 = shalt.err (!%p324_p7)
}
  0x11   :  { %s379_s28 = smov 128   ;;  %s380_s29 = smov 8  }
  0x12   :  { %24 = dma.hbm_to_vmem [thread:$0]  %s478_s0, 256, %s19_s19, [#allocation4], %s379_s28, %s379_s28, %s380_s29  }
  0x13   :  { %s381_s7 = smov [#allocation6]   ;;  %s328_s11 = scalar_lea.hbm %s481_s3, 1024 }
  0x14   :  { %s34_s8 = sshll.u32 %s381_s7, 4  ;;  %p329_p8 = scmp.ne.s32.totalorder %s481_s3, %s328_s11  ;;  %s35_s8 = int_to_ptr.vmem [resolvable:$true] %s34_s8 }
  0x15   :  { %p332_p9 = scmp.lt.u32.totalorder %s328_s11, %s481_s3 }
  0x17   :  { %p334_p10 = pnand %p332_p9, %p329_p8 }
  0x19   :  { %337 = shalt.err (!%p334_p10)
}
  0x1a   :  { %s338_s16 = scalar_lea.vmem %s35_s8, 1024  ;;  %p343_p12 = scmp.lt.s32.totalorder %s35_s8, %s35_s8 }
  0x1b   :  { %p339_p11 = scmp.ne.s32.totalorder %s35_s8, %s338_s16  ;;  %p344_p13 = scmp.lt.s32.totalorder %s338_s16, %s338_s16 }
  0x1d   :  { %p345_p0 = por %p344_p13, %p343_p12 }
  0x1f   :  { %p346_p1 = pnand %p345_p0, %p339_p11 }
  0x21   :  { %349 = shalt.err (!%p346_p1)
}
  0x22   :  { %s382_s0 = smov 64   ;;  %s383_s17 = smov 4  }
  0x23   :  { %40 = dma.hbm_to_vmem [thread:$0]  %s481_s3, 1024, %s35_s8, [#allocation7], %s382_s0, %s382_s0, %s383_s17  }
  0x24   :  { %372 = dma.done.wait [#allocation4], 256  }
  0x25   :  { %373 = vsyncadd [#allocation4], 4294967040 }
  0x26   :  { %374 = dma.done.wait [#allocation7], 1024  }
  0x27   :  { %375 = vsyncadd [#allocation7], 4294966272  ;;  %v444_v0 = vld [vmem:[#allocation3] sm:$0xff]  ;;  %v446_v1 = vld [vmem:[#allocation3 + $0x8] sm:$0xff]  ;;  %v384_v3 = vmov 0.0   ;;  %v64_v4 = vlaneseq  ;;  %vm385_vm1 = vmmov 0  }
  0x28   :  { %56 = vadd.xlane.f32.xlu0 %v444_v0  ;;  %v294_v2 = vld [vmem:[#allocation6] sm:$0xff]   ;;  %265 = vmatprep.subr.bf16.mxu0 %v384_v3  ;;  %v295_v16 = vld [vmem:[#allocation6 + $0x8] sm:$0xff]   ;;  %v296_v17 = vld [vmem:[#allocation6 + $0x10] sm:$0xff]  }
  0x29   :  { %266 = vmatpush3.bf16.msra.mxu0 %v294_v2  ;;  %v65_v6 = vand.u32 127, %v64_v4  ;;  %v297_v18 = vld [vmem:[#allocation6 + $0x18] sm:$0xff]   ;;  %v298_v19 = vld [vmem:[#allocation6 + $0x20] sm:$0xff]   ;;  %281 = vmatprep.mubr.msk.bf16.mxu0 %vm385_vm1, %v384_v3  ;;  %v299_v20 = vld [vmem:[#allocation6 + $0x28] sm:$0xff]  }
  0x2a   :  { %267 = vmatprep.subr.bf16.mxu0 %v384_v3  ;;  %v300_v21 = vld [vmem:[#allocation6 + $0x30] sm:$0xff]   ;;  %v301_v22 = vld [vmem:[#allocation6 + $0x38] sm:$0xff]  }
  0x2b   :  { %vm66_vm0 = vcmp.lt.s32.totalorder %v65_v6, 32  ;;  %v245_v31 = vld [vmem:[%s479_s1] ss:$0 sm:$0xff]  ;;  %s386_s1 = smov [#allocation8]  }
  0x2c   :  { %58 = vadd.xlane.f32.xlu0 %v446_v1  ;;  %v246_v35 = vld [vmem:[%s480_s2] ss:$0 sm:$0xff]  ;;  %s231_s25 = sshll.u32 %s386_s1, 4  ;;  %s232_s25 = int_to_ptr.vmem [resolvable:$true] %s231_s25 }
  0x2d   :  { %268 = vmatpush3.bf16.msra.mxu0 %v295_v16  ;;  %v247_v40 = vld [vmem:[%s482_s4] ss:$0 sm:$0xff]  ;;  %s350_s2 = scalar_lea.vmem %s232_s25, 256  ;;  %p355_p3 = scmp.lt.s32.totalorder %s232_s25, %s232_s25 }
  0x2e   :  { %269 = vmatprep.subr.bf16.mxu0 %v384_v3  ;;  %p351_p2 = scmp.ne.s32.totalorder %s232_s25, %s350_s2  ;;  %p356_p4 = scmp.lt.s32.totalorder %s350_s2, %s350_s2 }
  0x30   :  { %p357_p5 = por %p356_p4, %p355_p3 }
  0x31   :  { %270 = vmatpush3.bf16.msra.mxu0 %v296_v17 }
  0x32   :  { %271 = vmatprep.subr.bf16.mxu0 %v384_v3  ;;  %p358_p6 = pnand %p357_p5, %p351_p2 }
  0x35   :  { %272 = vmatpush3.bf16.msra.mxu0 %v297_v18 }
  0x36   :  { %273 = vmatprep.subr.bf16.mxu0 %v384_v3 }
  0x39   :  { %274 = vmatpush3.bf16.msra.mxu0 %v298_v19 }
  0x3a   :  { %275 = vmatprep.subr.bf16.mxu0 %v384_v3 }
  0x3d   :  { %276 = vmatpush3.bf16.msra.mxu0 %v299_v20 }
  0x3e   :  { %277 = vmatprep.subr.bf16.mxu0 %v384_v3 }
  0x41   :  { %278 = vmatpush3.bf16.msra.mxu0 %v300_v21 }
  0x42   :  { %279 = vmatprep.subr.bf16.mxu0 %v384_v3 }
  0x45   :  { %280 = vmatpush3.bf16.msra.mxu0 %v301_v22 }
  0xb5   :  { %v57_v5 = vpop.xlane.xlu0 %56 }
  0xb6   :  { %v60_v7 = vmul.f32 0.03125, %v57_v5 }
  0xb8   :  { %v62_v8 = vsub.f32 %v444_v0, %v60_v7 }
  0xb9   :  { %v59_v9 = vpop.xlane.xlu0 %58 }
  0xba   :  { %v61_v10 = vmul.f32 0.03125, %v59_v9  ;;  %v67_v11 = vmul.f32 %v62_v8, %v62_v8 }
  0xbc   :  { %v63_v12 = vsub.f32 %v446_v1, %v61_v10  ;;  %v69_v13 = vsel %vm66_vm0, %v67_v11, 0.0 }
  0xbd   :  { %71 = vadd.xlane.f32.xlu1 %v69_v13 }
  0xbe   :  { %v68_v14 = vmul.f32 %v63_v12, %v63_v12 }
  0xc0   :  { %v70_v15 = vsel %vm66_vm0, %v68_v14, 0.0 }
  0xc1   :  { %73 = vadd.xlane.f32.xlu1 %v70_v15 }
 0x14a   :  { %v72_v23 = vpop.xlane.xlu1 %71 }
 0x14b   :  { %v75_v24 = vmul.f32 0.03125, %v72_v23 }
 0x14d   :  { %v77_v25 = vadd.f32 1e-05, %v75_v24 }
 0x14e   :  { %v74_v26 = vpop.xlane.xlu1 %73 }
 0x14f   :  { %302 = vrsqrt.f32 %v77_v25  ;;  %v76_v27 = vmul.f32 0.03125, %v74_v26 }
 0x151   :  { %v78_v28 = vadd.f32 1e-05, %v76_v27 }
 0x153   :  { %304 = vrsqrt.f32 %v78_v28 }
 0x159   :  { %v303_v29 = vpop.eup %302 }
 0x15a   :  { %v81_v30 = vmul.f32 %v303_v29, %v62_v8 }
 0x15c   :  { %v90_v34 = vmul.f32 %v245_v31, %v81_v30 }
 0x15d   :  { %v305_v32 = vpop.eup %304 }
 0x15e   :  { %v82_v33 = vmul.f32 %v305_v32, %v63_v12  ;;  %v99_v37 = vadd.f32 %v246_v35, %v90_v34 }
 0x160   :  { %v91_v36 = vmul.f32 %v245_v31, %v82_v33 }
 0x162   :  { %v100_v38 = vadd.f32 %v246_v35, %v91_v36 }
 0x164   :  { %v101_v39 = vpack.c.bf16 %v100_v38, %v99_v37 }
 0x166   :  { %282 = vmatmul.mubr.bf16.vlgmr.msra.gmra.mrb[0].mxu0 %v101_v39 }
 0x239   :  { %v209_v41 = vpop.f32.mrb[0].mxu0 }
 0x23a   :  { %v210_v42 = vadd.f32 %v247_v40, %v209_v41  ;;  %v283_v43 = vpop.f32.mrb[1].mxu0 }
 0x23b   :  { %v212_v44 = vpop.f32.mrb[2].mxu0 }
 0x23c   :  { %v222_v45 = vadd.f32 %v210_v42, %v444_v0  ;;  %v213_v46 = vadd.f32 %v247_v40, %v212_v44  ;;  %v284_v47 = vpop.f32.mrb[3].mxu0 }
 0x23e   :  { %224 = vst [vmem:[#allocation8] sm:$0xff] %v222_v45  ;;  %v223_v48 = vadd.f32 %v213_v46, %v446_v1 }
 0x240   :  { %225 = vst [vmem:[#allocation8 + $0x8] sm:$0xff] %v223_v48 }
 0x241   :  { %361 = shalt.err (!%p358_p6)
}
 0x242   :  { %s362_s27 = scalar_lea.hbm %s483_s5, 256 }
 0x243   :  { %p363_p7 = scmp.ne.s32.totalorder %s483_s5, %s362_s27  ;;  %p366_p8 = scmp.lt.u32.totalorder %s362_s27, %s483_s5 }
 0x245   :  { %p368_p9 = pnand %p366_p8, %p363_p7 }
 0x247   :  { %371 = shalt.err (!%p368_p9)
}
 0x248   :  { %237 = dma.vmem_to_hbm [thread:$0]  %s232_s25, 256, %s483_s5, [#allocation5], %s379_s28, %s379_s28, %s380_s29  }
 0x249   :  { %376 = dma.done.wait [#allocation5], 256  }
 0x24a   :  { %377 = vsyncadd [#allocation5], 4294967040 }
 0x24b   :  { %241 = vsyncpa [#allocation4], 1 }
 0x24c   :  { %242 = vsyncpa [#allocation7], 1 }
 0x24d   :  { %243 = vsyncpa [#allocation5], 1 }

</bundles_post_ra>
